<compile_context>
chip_gen: v6e
topology: v6e:2x2x1
jax: 0.10.0
libtpu: 0.0.40
codegen_flags: <defaults>
</compile_context>

<pallas_src>
import functools

import jax
import jax.numpy as jnp
from jax.experimental import pallas as pl
from jax.experimental.pallas import tpu as pltpu

_LANE = 128


def _round_up(x, m):
    return -(-x // m) * m


# ----------------------------- Pallas kernels ------------------------------


def _pool_kernel(cf_ref, w1_ref, b1_ref, w2_ref, b2_ref, psum_ref):
    """complex_conv (1x1 conv 2C->mid -> SimpleGate -> 1x1 conv mid/2 -> 2C) on
    one (2C, TILE) pixel block, emitting only the per-tile spatial partial sum
    of the transformed feature (feeds the SCA global average pool).  No
    full-size intermediate is written back to HBM."""
    cf = cf_ref[0]                                               # (2C, TILE)
    h = jnp.dot(w1_ref[...], cf, preferred_element_type=jnp.float32) + b1_ref[...]
    half = h.shape[0] // 2
    g = h[:half, :] * h[half:, :]                                # SimpleGate
    y = jnp.dot(w2_ref[...], g, preferred_element_type=jnp.float32) + b2_ref[...]
    psum_ref[0, 0] = jnp.sum(y, axis=1, keepdims=True)           # (2C, 1) partial sum


def _transform_scale_kernel(cf_ref, scale_ref, w1_ref, b1_ref, w2_ref, b2_ref,
                            out_ref):
    """Recompute complex_conv on the tile (K=8 dots, far below the HBM
    roofline) and apply the per-batch (1 + attn) scale hoisted to JAX."""
    cf = cf_ref[0]                                               # (2C, TILE)
    h = jnp.dot(w1_ref[...], cf, preferred_element_type=jnp.float32) + b1_ref[...]
    half = h.shape[0] // 2
    g = h[:half, :] * h[half:, :]
    y = jnp.dot(w2_ref[...], g, preferred_element_type=jnp.float32) + b2_ref[...]
    out_ref[0] = (y * scale_ref[0]).astype(out_ref.dtype)        # (2C, TILE)


# ------------------------------ wrapper -------------------------------------


def _pick_tile(hw, c2, requested=None, block_budget_bytes=1 << 20, cap=32768):
    """Pixel-tile (lane) size: multiple of 128, large enough to amortize the
    ~0.35us fixed grid-step cost, small enough that double-buffered blocks +
    conv intermediates stay a few MiB of VMEM on every TPU generation."""
    hwp = _round_up(hw, _LANE)
    if requested is not None:
        if requested % _LANE != 0:
            raise ValueError(f"tile must be a multiple of {_LANE}, got {requested}")
        return min(requested, hwp)
    t = (block_budget_bytes // (c2 * 4)) // _LANE * _LANE
    return max(_LANE, min(t, cap, hwp))


def _vmem_limit_bytes(tile, c2, mid):
    """Scoped-VMEM request derived from actual block bytes (double-buffered
    in/out tiles of kernel 2 + worst-case materialized conv intermediates)."""
    block = tile * c2 * 4
    interm = tile * (mid + mid // 2 + c2) * 4
    need = 4 * block + 2 * interm + (2 << 20)
    return int(min(max(need, 16 << 20), 64 << 20))


def fca_forward(params, x, *, tile=None):
    """FCAttention forward.  x: (B, C, H, W) float32 (NCHW, like PyTorch)."""
    p = params
    x = x.astype(jnp.float32)
    B, C, H, W = x.shape
    HW = H * W
    C2 = 2 * C
    mid = p['w1'].shape[0]
    half = mid // 2

    tile = _pick_tile(HW, C2, tile)
    n_tiles = pl.cdiv(HW, tile)
    HWp = n_tiles * tile
    n_pad = HWp - HW
    grid = (B, n_tiles)

    # TODO(synk): fft2/ifft2 have no Pallas TPU primitive; kept in jnp (matches
    # torch.fft.fft2(..., norm='ortho') / abs(ifft2(..., norm='ortho'))).
    fft = jnp.fft.fft2(x, axes=(-2, -1), norm='ortho')
    cf = jnp.concatenate([jnp.real(fft), jnp.imag(fft)], axis=1).reshape(B, C2, HW)
    if n_pad:
        cf = jnp.pad(cf, ((0, 0), (0, 0), (0, n_pad)))

    def _wspec(shape):
        return pl.BlockSpec(shape, lambda b, t: (0,) * len(shape))

    cf_spec = pl.BlockSpec((1, C2, tile), lambda b, t: (b, 0, t))

    cparams = pltpu.CompilerParams(
        dimension_semantics=("parallel", "parallel"),
        vmem_limit_bytes=_vmem_limit_bytes(tile, C2, mid))

    # ---- kernel 1: complex_conv, emitting per-(batch, tile) partial sums ----
    psums = pl.pallas_call(
        _pool_kernel,
        out_shape=jax.ShapeDtypeStruct((B, n_tiles, C2, 1), jnp.float32),
        grid=grid,
        in_specs=[cf_spec,
                  _wspec((mid, C2)), _wspec((mid, 1)),
                  _wspec((C2, half)), _wspec((C2, 1))],
        out_specs=pl.BlockSpec((1, 1, C2, 1), lambda b, t: (b, t, 0, 0)),
        compiler_params=cparams,
    )(cf, p['w1'], p['b1'], p['w2'], p['b2'])

    # ---- tiny per-batch work in plain JAX (hoisted out of the tile grid) ----
    pooled = jnp.sum(psums[..., 0], axis=1)                       # (B, 2C) spatial sums
    if n_pad:
        # zero-padded pixels contribute the constant y0 = w2 @ SG(b1) + b2 each
        g0 = p['b1'][:half, 0] * p['b1'][half:, 0]
        y0 = p['w2'] @ g0 + p['b2'][:, 0]
        pooled = pooled - n_pad * y0
    mean = pooled / HW                                            # (B, 2C) spatial means
    attn_r = mean[:, :C] @ p['wsca'].T + p['bsca'][:, 0]          # shared SCA conv
    attn_i = mean[:, C:] @ p['wsca'].T + p['bsca'][:, 0]
    scale = (1.0 + jnp.concatenate([attn_r, attn_i], axis=1))[:, :, None]  # (B, 2C, 1)

    # ---- kernel 2: recompute complex_conv per tile and apply (1+attn) scale ----
    out = pl.pallas_call(
        _transform_scale_kernel,
        out_shape=jax.ShapeDtypeStruct((B, C2, HWp), jnp.float32),
        grid=grid,
        in_specs=[cf_spec,
                  pl.BlockSpec((1, C2, 1), lambda b, t: (b, 0, 0)),
                  _wspec((mid, C2)), _wspec((mid, 1)),
                  _wspec((C2, half)), _wspec((C2, 1))],
        out_specs=cf_spec,
        compiler_params=cparams,
    )(cf, scale, p['w1'], p['b1'], p['w2'], p['b2'])

    out = out[:, :, :HW].reshape(B, C2, H, W)
    fft_new = jax.lax.complex(out[:, :C], out[:, C:])
    return jnp.abs(jnp.fft.ifft2(fft_new, axes=(-2, -1), norm='ortho'))


# ------------------------------ reference ------------------------------------


def fca_reference(params, x):
    """Pure-JAX reference implementing the same torch semantics."""
    p = params
    x = x.astype(jnp.float32)
    B, C, H, W = x.shape
    mid = p['w1'].shape[0]
    fft = jnp.fft.fft2(x, axes=(-2, -1), norm='ortho')
    cf = jnp.concatenate([jnp.real(fft), jnp.imag(fft)], axis=1)      # (B,2C,H,W)
    h = jnp.einsum('oi,bihw->bohw', p['w1'], cf) + p['b1'][:, 0][None, :, None, None]
    g = h[:, :mid // 2] * h[:, mid // 2:]
    y = jnp.einsum('oi,bihw->bohw', p['w2'], g) + p['b2'][:, 0][None, :, None, None]
    yr, yi = y[:, :C], y[:, C:]
    ar = yr.mean(axis=(2, 3)) @ p['wsca'].T + p['bsca'][:, 0]
    ai = yi.mean(axis=(2, 3)) @ p['wsca'].T + p['bsca'][:, 0]
    rn = yr * (1.0 + ar[:, :, None, None])
    inew = yi * (1.0 + ai[:, :, None, None])
    return jnp.abs(jnp.fft.ifft2(jax.lax.complex(rn, inew), axes=(-2, -1), norm='ortho'))


# ------------------------------ parameters ----------------------------------


def init_params(key, channels=4, expand_ratio=2):
    """Deterministic stand-in for the torch Conv2d parameters.  1x1 conv weights
    are kept in the torch (C_out, C_in) layout; biases are (C_out, 1) columns so
    they broadcast over the pixel (lane) axis inside the kernels."""
    C = channels
    C2 = 2 * C
    mid = int(C2 * expand_ratio)          # complex_conv_ch
    ks = jax.random.split(key, 6)
    nrm = lambda k, shape, s=0.2: s * jax.random.normal(k, shape, jnp.float32)
    return {
        'w1': nrm(ks[0], (mid, C2)),          # complex_conv[0]: 2C -> mid, 1x1
        'b1': nrm(ks[1], (mid, 1), 0.05),
        'w2': nrm(ks[2], (C2, mid // 2)),     # complex_conv[2]: mid/2 -> 2C, 1x1
        'b2': nrm(ks[3], (C2, 1), 0.05),
        'wsca': nrm(ks[4], (C, C)),           # sca conv: C -> C, 1x1 (shared r/i)
        'bsca': nrm(ks[5], (C, 1), 0.05),
    }


# --------------------------------- main --------------------------------------

if __name__ == "__main__":
    B, C, H, W = 2, 4, 16, 16
    x = jax.random.normal(jax.random.PRNGKey(0), (B, C, H, W), jnp.float32)
    params = init_params(jax.random.PRNGKey(0), channels=C, expand_ratio=2)

    # tile=128 forces a 2-step pixel grid per batch so the multi-tile partial-sum
    # pooling path is exercised at this small test size (auto-tiling would pick
    # one 256-lane tile).
    fwd = jax.jit(functools.partial(fca_forward, tile=128))
    out = jax.block_until_ready(fwd(params, x))

    assert out.shape == (B, C, H, W), out.shape
    assert bool(jnp.all(jnp.isfinite(out)))

    ref = fca_reference(params, x)
    max_err = float(jnp.max(jnp.abs(out - ref)))
    assert max_err < 2e-2, f"max abs error vs reference: {max_err}"

    print("KERNEL_OK")
</pallas_src>

<mosaic_0001>
module attributes {stable_mosaic.version = 11 : i64} {
  func.func @_pool_kernel(%arg0: i32, %arg1: i32, %arg2: memref<1x8x128xf32, #tpu.memory_space<vmem>>, %arg3: memref<16x8xf32, #tpu.memory_space<vmem>>, %arg4: memref<16x1xf32, #tpu.memory_space<vmem>>, %arg5: memref<8x8xf32, #tpu.memory_space<vmem>>, %arg6: memref<8x1xf32, #tpu.memory_space<vmem>>, %arg7: memref<1x1x8x1xf32, #tpu.memory_space<vmem>>) attributes {dimension_semantics = [#tpu.dimension_semantics<parallel>, #tpu.dimension_semantics<parallel>], iteration_bounds = array<i64: 2, 2>, scalar_prefetch = 0 : i64, scratch_operands = 0 : i64, tpu.core_type = #tpu.core_type<tc>, window_params = [{transform_indices = @transform_0, window_bounds = array<i64: 1, 8, 128>}, {pipeline_mode = #tpu.pipeline_mode<synchronous>, transform_indices = @transform_1, window_bounds = array<i64: 16, 8>}, {pipeline_mode = #tpu.pipeline_mode<synchronous>, transform_indices = @transform_2, window_bounds = array<i64: 16, 1>}, {pipeline_mode = #tpu.pipeline_mode<synchronous>, transform_indices = @transform_3, window_bounds = array<i64: 8, 8>}, {pipeline_mode = #tpu.pipeline_mode<synchronous>, transform_indices = @transform_4, window_bounds = array<i64: 8, 1>}, {transform_indices = @transform_5, window_bounds = array<i64: 1, 1, 8, 1>}]} {
    %c0 = arith.constant 0 : index
    %c0_0 = arith.constant 0 : index
    %c0_1 = arith.constant 0 : index
    %0 = vector.load %arg2[%c0, %c0_0, %c0_1] : memref<1x8x128xf32, #tpu.memory_space<vmem>>, vector<1x8x128xf32>
    %1 = vector.shape_cast %0 : vector<1x8x128xf32> to vector<8x128xf32>
    %c0_2 = arith.constant 0 : index
    %c0_3 = arith.constant 0 : index
    %2 = vector.load %arg3[%c0_2, %c0_3] : memref<16x8xf32, #tpu.memory_space<vmem>>, vector<16x8xf32>
    %cst = arith.constant dense<0.000000e+00> : vector<16x128xf32>
    %3 = tpu.matmul %2, %1, %cst {dimension_numbers = #tpu.dot_dimension_numbers<[1], [0], [0], [1], [0, 0, 1, 1], [], []>} : vector<16x8xf32>, vector<8x128xf32>, vector<16x128xf32> -> vector<16x128xf32>
    %c0_4 = arith.constant 0 : index
    %c0_5 = arith.constant 0 : index
    %4 = vector.load %arg4[%c0_4, %c0_5] : memref<16x1xf32, #tpu.memory_space<vmem>>, vector<16x1xf32>
    %5 = vector.broadcast %4 : vector<16x1xf32> to vector<16x128xf32>
    %6 = arith.addf %3, %5 : vector<16x128xf32>
    %7 = vector.extract_strided_slice %6 {offsets = [0, 0], sizes = [8, 128], strides = [1, 1]} : vector<16x128xf32> to vector<8x128xf32>
    %8 = vector.extract_strided_slice %6 {offsets = [8, 0], sizes = [8, 128], strides = [1, 1]} : vector<16x128xf32> to vector<8x128xf32>
    %9 = arith.mulf %7, %8 : vector<8x128xf32>
    %c0_6 = arith.constant 0 : index
    %c0_7 = arith.constant 0 : index
    %10 = vector.load %arg5[%c0_6, %c0_7] : memref<8x8xf32, #tpu.memory_space<vmem>>, vector<8x8xf32>
    %cst_8 = arith.constant dense<0.000000e+00> : vector<8x128xf32>
    %11 = tpu.matmul %10, %9, %cst_8 {dimension_numbers = #tpu.dot_dimension_numbers<[1], [0], [0], [1], [0, 0, 1, 1], [], []>} : vector<8x8xf32>, vector<8x128xf32>, vector<8x128xf32> -> vector<8x128xf32>
    %c0_9 = arith.constant 0 : index
    %c0_10 = arith.constant 0 : index
    %12 = vector.load %arg6[%c0_9, %c0_10] : memref<8x1xf32, #tpu.memory_space<vmem>>, vector<8x1xf32>
    %13 = vector.broadcast %12 : vector<8x1xf32> to vector<8x128xf32>
    %14 = arith.addf %11, %13 : vector<8x128xf32>
    %cst_11 = arith.constant dense<0.000000e+00> : vector<8xf32>
    %15 = vector.multi_reduction <add>, %14, %cst_11 [1] : vector<8x128xf32> to vector<8xf32>
    %16 = vector.shape_cast %15 : vector<8xf32> to vector<8x1xf32>
    %c0_12 = arith.constant 0 : index
    %c0_13 = arith.constant 0 : index
    %c0_14 = arith.constant 0 : index
    %c0_15 = arith.constant 0 : index
    %17 = vector.load %arg7[%c0_12, %c0_13, %c0_14, %c0_15] : memref<1x1x8x1xf32, #tpu.memory_space<vmem>>, vector<1x1x8x1xf32>
    %18 = vector.shape_cast %17 : vector<1x1x8x1xf32> to vector<8x1xf32>
    %19 = vector.shape_cast %16 : vector<8x1xf32> to vector<1x1x8x1xf32>
    tpu.vector_store %arg7[%c0_12, %c0_13, %c0_14, %c0_15], %19 {strides = array<i32>} : memref<1x1x8x1xf32, #tpu.memory_space<vmem>>, vector<1x1x8x1xf32>,
    return
  }
  func.func @transform_0(%arg0: i32, %arg1: i32) -> (i32, i32, i32) {
    %c0_i32 = arith.constant 0 : i32
    %c0_i32_0 = arith.constant 0 : i32
    return %arg0, %c0_i32, %arg1 : i32, i32, i32
  }
  func.func @transform_1(%arg0: i32, %arg1: i32) -> (i32, i32) {
    %c0_i32 = arith.constant 0 : i32
    %c0_i32_0 = arith.constant 0 : i32
    %c0_i32_1 = arith.constant 0 : i32
    return %c0_i32, %c0_i32_0 : i32, i32
  }
  func.func @transform_2(%arg0: i32, %arg1: i32) -> (i32, i32) {
    %c0_i32 = arith.constant 0 : i32
    %c0_i32_0 = arith.constant 0 : i32
    %c0_i32_1 = arith.constant 0 : i32
    return %c0_i32, %c0_i32_0 : i32, i32
  }
  func.func @transform_3(%arg0: i32, %arg1: i32) -> (i32, i32) {
    %c0_i32 = arith.constant 0 : i32
    %c0_i32_0 = arith.constant 0 : i32
    %c0_i32_1 = arith.constant 0 : i32
    return %c0_i32, %c0_i32_0 : i32, i32
  }
  func.func @transform_4(%arg0: i32, %arg1: i32) -> (i32, i32) {
    %c0_i32 = arith.constant 0 : i32
    %c0_i32_0 = arith.constant 0 : i32
    %c0_i32_1 = arith.constant 0 : i32
    return %c0_i32, %c0_i32_0 : i32, i32
  }
  func.func @transform_5(%arg0: i32, %arg1: i32) -> (i32, i32, i32, i32) {
    %c0_i32 = arith.constant 0 : i32
    %c0_i32_0 = arith.constant 0 : i32
    %c0_i32_1 = arith.constant 0 : i32
    return %arg0, %arg1, %c0_i32, %c0_i32_0 : i32, i32, i32, i32
  }
}

module attributes {stable_mosaic.version = 11 : i64} {
  func.func @_transform_scale_kernel(%arg0: i32, %arg1: i32, %arg2: memref<1x8x128xf32, #tpu.memory_space<vmem>>, %arg3: memref<1x8x1xf32, #tpu.memory_space<vmem>>, %arg4: memref<16x8xf32, #tpu.memory_space<vmem>>, %arg5: memref<16x1xf32, #tpu.memory_space<vmem>>, %arg6: memref<8x8xf32, #tpu.memory_space<vmem>>, %arg7: memref<8x1xf32, #tpu.memory_space<vmem>>, %arg8: memref<1x8x128xf32, #tpu.memory_space<vmem>>) attributes {dimension_semantics = [#tpu.dimension_semantics<parallel>, #tpu.dimension_semantics<parallel>], iteration_bounds = array<i64: 2, 2>, scalar_prefetch = 0 : i64, scratch_operands = 0 : i64, tpu.core_type = #tpu.core_type<tc>, window_params = [{transform_indices = @transform_0, window_bounds = array<i64: 1, 8, 128>}, {transform_indices = @transform_1, window_bounds = array<i64: 1, 8, 1>}, {pipeline_mode = #tpu.pipeline_mode<synchronous>, transform_indices = @transform_2, window_bounds = array<i64: 16, 8>}, {pipeline_mode = #tpu.pipeline_mode<synchronous>, transform_indices = @transform_3, window_bounds = array<i64: 16, 1>}, {pipeline_mode = #tpu.pipeline_mode<synchronous>, transform_indices = @transform_4, window_bounds = array<i64: 8, 8>}, {pipeline_mode = #tpu.pipeline_mode<synchronous>, transform_indices = @transform_5, window_bounds = array<i64: 8, 1>}, {transform_indices = @transform_6, window_bounds = array<i64: 1, 8, 128>}]} {
    %c0 = arith.constant 0 : index
    %c0_0 = arith.constant 0 : index
    %c0_1 = arith.constant 0 : index
    %0 = vector.load %arg2[%c0, %c0_0, %c0_1] : memref<1x8x128xf32, #tpu.memory_space<vmem>>, vector<1x8x128xf32>
    %1 = vector.shape_cast %0 : vector<1x8x128xf32> to vector<8x128xf32>
    %c0_2 = arith.constant 0 : index
    %c0_3 = arith.constant 0 : index
    %2 = vector.load %arg4[%c0_2, %c0_3] : memref<16x8xf32, #tpu.memory_space<vmem>>, vector<16x8xf32>
    %cst = arith.constant dense<0.000000e+00> : vector<16x128xf32>
    %3 = tpu.matmul %2, %1, %cst {dimension_numbers = #tpu.dot_dimension_numbers<[1], [0], [0], [1], [0, 0, 1, 1], [], []>} : vector<16x8xf32>, vector<8x128xf32>, vector<16x128xf32> -> vector<16x128xf32>
    %c0_4 = arith.constant 0 : index
    %c0_5 = arith.constant 0 : index
    %4 = vector.load %arg5[%c0_4, %c0_5] : memref<16x1xf32, #tpu.memory_space<vmem>>, vector<16x1xf32>
    %5 = vector.broadcast %4 : vector<16x1xf32> to vector<16x128xf32>
    %6 = arith.addf %3, %5 : vector<16x128xf32>
    %7 = vector.extract_strided_slice %6 {offsets = [0, 0], sizes = [8, 128], strides = [1, 1]} : vector<16x128xf32> to vector<8x128xf32>
    %8 = vector.extract_strided_slice %6 {offsets = [8, 0], sizes = [8, 128], strides = [1, 1]} : vector<16x128xf32> to vector<8x128xf32>
    %9 = arith.mulf %7, %8 : vector<8x128xf32>
    %c0_6 = arith.constant 0 : index
    %c0_7 = arith.constant 0 : index
    %10 = vector.load %arg6[%c0_6, %c0_7] : memref<8x8xf32, #tpu.memory_space<vmem>>, vector<8x8xf32>
    %cst_8 = arith.constant dense<0.000000e+00> : vector<8x128xf32>
    %11 = tpu.matmul %10, %9, %cst_8 {dimension_numbers = #tpu.dot_dimension_numbers<[1], [0], [0], [1], [0, 0, 1, 1], [], []>} : vector<8x8xf32>, vector<8x128xf32>, vector<8x128xf32> -> vector<8x128xf32>
    %c0_9 = arith.constant 0 : index
    %c0_10 = arith.constant 0 : index
    %12 = vector.load %arg7[%c0_9, %c0_10] : memref<8x1xf32, #tpu.memory_space<vmem>>, vector<8x1xf32>
    %13 = vector.broadcast %12 : vector<8x1xf32> to vector<8x128xf32>
    %14 = arith.addf %11, %13 : vector<8x128xf32>
    %c0_11 = arith.constant 0 : index
    %c0_12 = arith.constant 0 : index
    %c0_13 = arith.constant 0 : index
    %15 = vector.load %arg3[%c0_11, %c0_12, %c0_13] : memref<1x8x1xf32, #tpu.memory_space<vmem>>, vector<1x8x1xf32>
    %16 = vector.shape_cast %15 : vector<1x8x1xf32> to vector<8x1xf32>
    %17 = vector.broadcast %16 : vector<8x1xf32> to vector<8x128xf32>
    %18 = arith.mulf %14, %17 : vector<8x128xf32>
    %c0_14 = arith.constant 0 : index
    %c0_15 = arith.constant 0 : index
    %c0_16 = arith.constant 0 : index
    %19 = vector.load %arg8[%c0_14, %c0_15, %c0_16] : memref<1x8x128xf32, #tpu.memory_space<vmem>>, vector<1x8x128xf32>
    %20 = vector.shape_cast %19 : vector<1x8x128xf32> to vector<8x128xf32>
    %21 = vector.shape_cast %18 : vector<8x128xf32> to vector<1x8x128xf32>
    tpu.vector_store %arg8[%c0_14, %c0_15, %c0_16], %21 {strides = array<i32>} : memref<1x8x128xf32, #tpu.memory_space<vmem>>, vector<1x8x128xf32>,
    return
  }
  func.func @transform_0(%arg0: i32, %arg1: i32) -> (i32, i32, i32) {
    %c0_i32 = arith.constant 0 : i32
    %c0_i32_0 = arith.constant 0 : i32
    return %arg0, %c0_i32, %arg1 : i32, i32, i32
  }
  func.func @transform_1(%arg0: i32, %arg1: i32) -> (i32, i32, i32) {
    %c0_i32 = arith.constant 0 : i32
    %c0_i32_0 = arith.constant 0 : i32
    %c0_i32_1 = arith.constant 0 : i32
    return %arg0, %c0_i32, %c0_i32_0 : i32, i32, i32
  }
  func.func @transform_2(%arg0: i32, %arg1: i32) -> (i32, i32) {
    %c0_i32 = arith.constant 0 : i32
    %c0_i32_0 = arith.constant 0 : i32
    %c0_i32_1 = arith.constant 0 : i32
    return %c0_i32, %c0_i32_0 : i32, i32
  }
  func.func @transform_3(%arg0: i32, %arg1: i32) -> (i32, i32) {
    %c0_i32 = arith.constant 0 : i32
    %c0_i32_0 = arith.constant 0 : i32
    %c0_i32_1 = arith.constant 0 : i32
    return %c0_i32, %c0_i32_0 : i32, i32
  }
  func.func @transform_4(%arg0: i32, %arg1: i32) -> (i32, i32) {
    %c0_i32 = arith.constant 0 : i32
    %c0_i32_0 = arith.constant 0 : i32
    %c0_i32_1 = arith.constant 0 : i32
    return %c0_i32, %c0_i32_0 : i32, i32
  }
  func.func @transform_5(%arg0: i32, %arg1: i32) -> (i32, i32) {
    %c0_i32 = arith.constant 0 : i32
    %c0_i32_0 = arith.constant 0 : i32
    %c0_i32_1 = arith.constant 0 : i32
    return %c0_i32, %c0_i32_0 : i32, i32
  }
  func.func @transform_6(%arg0: i32, %arg1: i32) -> (i32, i32, i32) {
    %c0_i32 = arith.constant 0 : i32
    %c0_i32_0 = arith.constant 0 : i32
    return %arg0, %c0_i32, %arg1 : i32, i32, i32
  }
}

</mosaic_0001>

<bundles_post_ra>
// kernel: fca_forward.3
= control target key start
LH: loop header
LB: loop body
LE: loop exit
PB: predicated region body
PF: predicated region fallthrough
CT: control target
= control target key end

     0   :  { %s737_s21 = smov 0   ;;  %s739_s22 = smov 0   ;;  %s819_s0 = inlined_call_operand.vmem [shape: f32[2,8,256], index: 0, kind: input, shape index: {}]   ;;  %s820_s1 = inlined_call_operand.vmem [shape: f32[2,8,1], index: 1, kind: input, shape index: {}]   ;;  %s821_s2 = inlined_call_operand.vmem [shape: f32[16,8], index: 2, kind: input, shape index: {}]   ;;  %s822_s3 = inlined_call_operand.vmem [shape: f32[16,1], index: 3, kind: input, shape index: {}]   ;;  %s823_s4 = inlined_call_operand.vmem [shape: f32[8,8], index: 4, kind: input, shape index: {}]   ;;  %s824_s5 = inlined_call_operand.vmem [shape: f32[8,1], index: 5, kind: input, shape index: {}]   ;;  %s825_s6 = inlined_call_operand.vmem [shape: f32[2,8,256], index: 6, kind: output, shape index: {}]  }
   0x1   :  { %s741_s23 = smov 0   ;;  %s743_s24 = smov 0  }
   0x2   :  { %s745_s25 = smov 0  }
   0x3 LB: > { %s25_s26 = sadd.s32 1, %s689_s23  ;;  %s28_s27 = sadd.s32 1, %s693_s24  ;;  %s697_s25 = sphi %s745_s25, %s16_s25   ;;  %s693_s24 = sphi %s743_s24, %s829_s24   ;;  %s689_s23 = sphi %s741_s23, %s828_s23   ;;  %s685_s22 = sphi %s739_s22, %s827_s22   ;;  %s681_s21 = sphi %s737_s21, %s826_s21  }
   0x4   : > { %p26_p0 = scmp.ge.s32.totalorder %s25_s26, 2  ;;  %p588_p1 = scmp.ge.s32.totalorder %s697_s25, 1 }
   0x5   : > { %p240_p2 = scmp.lt.s32.totalorder %s697_s25, 5 }
   0x6   : > { %s831_s26 = smov (%p26_p0, %s25_s26), 0  ;;  %s833_s27 = smov (!%p26_p0, %s28_s27), %s693_s24 }
   0x7   : > { %p241_p3 = pnand %p588_p1, %p240_p2  ;;  %p30_p4 = scmp.ge.s32.totalorder %s833_s27, 2 }
   0x8   : > { %p280_p5 = scmp.lt.s32.totalorder (!%p241_p3), %s685_s22, 1  ;;  %p282_p6 = scmp.lt.s32.totalorder (!%p241_p3), %s681_s21, 1 }
   0x9   : > { %s835_s27 = smov (%p30_p4, %s833_s27), 0  ;;  %244 = sbr.rel (%p241_p3) target bundleno = 420 (0x1a4), region = 44 }
   0xe   : > { %v301_v0 = vld [vmem:[%s821_s2] sm:$0xff]  ;;  %vm315_vm0 = vcmask 64512   ;;  %v699_v1 = vmov 0   ;;  %s837_s22 = smov (!%p280_p5, %s685_s22), 1  ;;  %s839_s21 = smov (!%p282_p6, %s681_s21), 1  ;;  %v304_v3 = vld [vmem:[%s822_s3 + $0x8] sm:$0xff] }
   0xf   : > { %606 = vmatprep.mubr.msk.f32.mxu0 %vm315_vm0, %v301_v0  ;;  %657 = vset.pattern.permute.xlu0 %v699_v1  ;;  %v303_v2 = vld [vmem:[%s822_s3] sm:$0xff]  ;;  %s589_s10 = sshll.u32 %s837_s22, 1  ;;  %v302_v5 = vld [vmem:[%s821_s2 + $0x8] sm:$0xff]  ;;  %v700_v6 = vmov 0.0   ;;  %vm701_vm1 = vmmov 0   ;;  %s591_s20 = sshll.u32 %s837_s22, 3 }
  0x10   : > { %307 = vperm.xlu0 %657, %v303_v2   ;;  %658 = vset.pattern.permute.xlu1 %v699_v1  ;;  %s777_s11 = sadd.s32 %s589_s10, %s839_s21  ;;  %v399_v7 = vld [vmem:[%s824_s5] sm:$0xff]  ;;  %s291_s29 = scalar_lea.vmem %s820_s1, %s591_s20 }
  0x11   : > { %s590_s12 = sshll.u32 %s777_s11, 3  ;;  %609 = vmatprep.subr.mxu1 %v700_v6  ;;  %611 = vmatprep.mubr.msk.f32.mxu1 %vm701_vm1, %v700_v6  ;;  %v478_v8 = vld [vmem:[%s291_s29] sm:$0xff] }
  0x12   : > { %s287_s15 = scalar_lea.vmem %s819_s0, %s590_s12  ;;  %402 = vperm.xlu1 %658, %v399_v7   ;;  %v398_v16 = vld [vmem:[%s823_s4] sm:$0xff]  ;;  %s299_s9 = scalar_lea.vmem %s825_s6, %s590_s12 }
  0x13   : > { %v300_v4 = vld [vmem:[%s287_s15] sm:$0xff] }
  0x14   : > { %312 = vperm.xlu0 %657, %v304_v3   ;;  %604 = vmatprep.subr.mxu0 %v300_v4 }
  0x15   : > { %605 = vmatpush3.msra.mxu0 %v300_v4 }
  0x16   : > { %607 = vmatmul.mubr.msk.f32.vlgmr.msra.gmra.mxu0 %vm315_vm0, %v302_v5  ;;  %481 = vperm.xlu1 %658, %v478_v8  }
  0x8b   : > { %v308_v9 = vpop.permute.xlu0 %307 }
  0x8d   : > { %v403_v17 = vpop.permute.xlu1 %402 }
  0x8f   : > { %v313_v11 = vpop.permute.xlu0 %312 }
  0x91   : > { %v482_v20 = vpop.permute.xlu1 %481 }
  0xd6   : > { %v608_v10 = vpop.f32.mrf.mxu0 }
  0xd7   : > { %v394_v13 = vadd.f32 %v608_v10, %v313_v11 }
  0xd8   : > { %v388_v12 = vpop.f32.mrf.mxu0 }
  0xd9   : > { %v389_v14 = vadd.f32 %v388_v12, %v308_v9 }
  0xdb   : > { %v397_v15 = vmul.f32 %v394_v13, %v389_v14 }
  0xdd   : > { %610 = vmatpush3.msra.mxu1 %v397_v15 }
  0xde   : > { %612 = vmatmul.mubr.msk.f32.vlgmr.msra.gmra.mxu1 %vm315_vm0, %v398_v16 }
 0x19e   : > { %v474_v18 = vpop.f32.mrf.mxu1 }
 0x19f   : > { %v475_v19 = vadd.f32 %v474_v18, %v403_v17 }
 0x1a0   : > { %v613_v21 = vpop.f32.mrf.mxu1 }
 0x1a1   : > { %v484_v22 = vmul.f32 %v482_v20, %v475_v19 }
 0x1a3   : > { %485 = vst [vmem:[%s299_s9] sm:$0xff] %v484_v22 }
 0x1a4 PF: > { %s16_s25 = sadd.s32 1, %s697_s25   ;;  %s826_s21 = smov %s689_s23 }
 0x1a5   : > { %p13_p7 = scmp.ge.s32.totalorder %s16_s25, 6   ;;  %s827_s22 = smov %s693_s24 }
 0x1a6   : > { %s828_s23 = smov %s831_s26  ;;  %s829_s24 = smov %s835_s27 }
 0x1a7   :  { %15 = sbr.rel (!%p13_p7) target bundleno = 3 (0x3), region = 77 }

// kernel: fca_forward.2
= control target key start
LH: loop header
LB: loop body
LE: loop exit
PB: predicated region body
PF: predicated region fallthrough
CT: control target
= control target key end

     0   :  { %s671_s18 = smov 0   ;;  %s673_s19 = smov 0   ;;  %s750_s0 = inlined_call_operand.vmem [shape: f32[2,8,256], index: 0, kind: input, shape index: {}]   ;;  %s751_s1 = inlined_call_operand.vmem [shape: f32[16,8], index: 1, kind: input, shape index: {}]   ;;  %s752_s2 = inlined_call_operand.vmem [shape: f32[16,1], index: 2, kind: input, shape index: {}]   ;;  %s753_s3 = inlined_call_operand.vmem [shape: f32[8,8], index: 3, kind: input, shape index: {}]   ;;  %s754_s4 = inlined_call_operand.vmem [shape: f32[8,1], index: 4, kind: input, shape index: {}]   ;;  %s755_s5 = inlined_call_operand.vmem [shape: f32[2,2,8,1], index: 5, kind: output, shape index: {}]  }
   0x1   :  { %s675_s20 = smov 0   ;;  %s677_s21 = smov 0  }
   0x2   :  { %s679_s22 = smov 0  }
   0x3 LB: > { %s24_s23 = sadd.s32 1, %s628_s20  ;;  %s27_s24 = sadd.s32 1, %s632_s21  ;;  %s636_s22 = sphi %s679_s22, %s15_s22   ;;  %s632_s21 = sphi %s677_s21, %s759_s21   ;;  %s628_s20 = sphi %s675_s20, %s758_s20   ;;  %s624_s19 = sphi %s673_s19, %s757_s19   ;;  %s620_s18 = sphi %s671_s18, %s756_s18  }
   0x4   : > { %p25_p0 = scmp.ge.s32.totalorder %s24_s23, 2  ;;  %p528_p1 = scmp.ge.s32.totalorder %s636_s22, 1 }
   0x5   : > { %p206_p2 = scmp.lt.s32.totalorder %s636_s22, 5 }
   0x6   : > { %s761_s23 = smov (%p25_p0, %s24_s23), 0  ;;  %s763_s24 = smov (!%p25_p0, %s27_s24), %s632_s21 }
   0x7   : > { %p207_p3 = pnand %p528_p1, %p206_p2  ;;  %p29_p4 = scmp.ge.s32.totalorder %s763_s24, 2 }
   0x8   : > { %p240_p5 = scmp.lt.s32.totalorder (!%p207_p3), %s624_s19, 1  ;;  %p242_p6 = scmp.lt.s32.totalorder (!%p207_p3), %s620_s18, 1 }
   0x9   : > { %s765_s24 = smov (%p29_p4, %s763_s24), 0  ;;  %210 = sbr.rel (%p207_p3) target bundleno = 556 (0x22c), region = 40 }
   0xe   : > { %v257_v0 = vld [vmem:[%s751_s1] sm:$0xff]  ;;  %vm271_vm0 = vcmask 64512   ;;  %v638_v1 = vmov 0   ;;  %s767_s19 = smov (!%p240_p5, %s624_s19), 1  ;;  %s769_s18 = smov (!%p242_p6, %s620_s18), 1  ;;  %v260_v3 = vld [vmem:[%s752_s2 + $0x8] sm:$0xff] }
   0xf   : > { %545 = vmatprep.mubr.msk.f32.mxu0 %vm271_vm0, %v257_v0  ;;  %596 = vset.pattern.permute.xlu0 %v638_v1  ;;  %v259_v2 = vld [vmem:[%s752_s2] sm:$0xff]  ;;  %s529_s6 = sshll.u32 %s767_s19, 1  ;;  %v258_v5 = vld [vmem:[%s751_s1 + $0x8] sm:$0xff]  ;;  %v639_v6 = vmov 0.0   ;;  %vm640_vm1 = vmmov 0   ;;  %vm436_vm2 = vcmask 7168  }
  0x10   : > { %263 = vperm.xlu0 %596, %v259_v2   ;;  %597 = vset.pattern.permute.xlu1 %v638_v1  ;;  %s711_s7 = sadd.s32 %s529_s6, %s769_s18  ;;  %v355_v7 = vld [vmem:[%s754_s4] sm:$0xff] }
  0x11   : > { %s530_s8 = sshll.u32 %s711_s7, 3  ;;  %548 = vmatprep.subr.mxu1 %v639_v6  ;;  %550 = vmatprep.mubr.msk.f32.mxu1 %vm640_vm1, %v639_v6  ;;  %v354_v15 = vld [vmem:[%s753_s3] sm:$0xff] }
  0x12   : > { %s247_s11 = scalar_lea.vmem %s750_s0, %s530_s8  ;;  %358 = vperm.xlu1 %597, %v355_v7   ;;  %s255_s25 = scalar_lea.vmem %s755_s5, %s530_s8 }
  0x13   : > { %v256_v4 = vld [vmem:[%s247_s11] sm:$0xff] }
  0x14   : > { %268 = vperm.xlu0 %596, %v260_v3   ;;  %543 = vmatprep.subr.mxu0 %v256_v4 }
  0x15   : > { %544 = vmatpush3.msra.mxu0 %v256_v4 }
  0x16   : > { %546 = vmatmul.mubr.msk.f32.vlgmr.msra.gmra.mxu0 %vm271_vm0, %v258_v5 }
  0x8b   : > { %v264_v8 = vpop.permute.xlu0 %263 }
  0x8d   : > { %v359_v16 = vpop.permute.xlu1 %358 }
  0x8f   : > { %v269_v10 = vpop.permute.xlu0 %268 }
  0xd6   : > { %v547_v9 = vpop.f32.mrf.mxu0 }
  0xd7   : > { %v350_v12 = vadd.f32 %v547_v9, %v269_v10 }
  0xd8   : > { %v344_v11 = vpop.f32.mrf.mxu0 }
  0xd9   : > { %v345_v13 = vadd.f32 %v344_v11, %v264_v8 }
  0xdb   : > { %v353_v14 = vmul.f32 %v350_v12, %v345_v13 }
  0xdd   : > { %549 = vmatpush3.msra.mxu1 %v353_v14 }
  0xde   : > { %551 = vmatmul.mubr.msk.f32.vlgmr.msra.gmra.mxu1 %vm271_vm0, %v354_v15 }
 0x19e   : > { %v430_v17 = vpop.f32.mrf.mxu1 }
 0x19f   : > { %v431_v18 = vadd.f32 %v430_v17, %v359_v16 }
 0x1a0   : > { %v552_v19 = vpop.f32.mrf.mxu1 }
 0x1a1   : > { %434 = vadd.xlane.f32.xlu1 %v431_v18 }
 0x22a   : > { %v435_v20 = vpop.xlane.xlu1 %434 }
 0x22b   : > { %437 = vst.msk [vmem:[%s255_s25] sm:$0xff] %vm436_vm2, %v435_v20 }
 0x22c PF: > { %s15_s22 = sadd.s32 1, %s636_s22   ;;  %s756_s18 = smov %s628_s20 }
 0x22d   : > { %p12_p7 = scmp.ge.s32.totalorder %s15_s22, 6   ;;  %s757_s19 = smov %s632_s21 }
 0x22e   : > { %s758_s20 = smov %s761_s23  ;;  %s759_s21 = smov %s765_s24 }
 0x22f   :  { %14 = sbr.rel (!%p12_p7) target bundleno = 3 (0x3), region = 70 }

</bundles_post_ra>
